<compile_context>
chip_gen: v7x
topology: tpu7x:2x2x1
jax: 0.10.0
libtpu: 0.0.40
codegen_flags: <defaults>
</compile_context>

<pallas_src>
import math
from functools import partial

import jax
import jax.numpy as jnp
from jax import lax
from jax.experimental import pallas as pl
from jax.experimental.pallas import tpu as pltpu

# dot_general dimension numbers for 2-D operands.
_NT = (((1,), (1,)), ((), ()))   # contract the last dim of both: lhs @ rhs.T
_NN = (((1,), (0,)), ((), ()))   # standard matmul


def _default_act_dtype():
    """bf16 elementwise math on chips with a packed-bf16 VPU (v6e / v7x); f32 otherwise."""
    try:
        kind = jax.devices()[0].device_kind.lower()
    except Exception:
        return jnp.float32
    if ("v6" in kind) or ("v7" in kind) or ("7x" in kind):
        return jnp.bfloat16
    return jnp.float32


@partial(jax.jit, static_argnames=("tile_b", "act_dtype"))
def custom_net_forward(x, params, *, tile_b=16384, act_dtype=None):
    """CustomNet forward.  x: (B, 10) float32, batch-major as produced upstream.

    Returns (B, 1) float32.  `act_dtype` sets the post-matmul bias/ReLU dtype and the
    layer-2/3 MXU operand dtype (f32 accumulation everywhere); None -> auto
    (bf16 on v6e/v7x, f32 on v5e and older).
    """
    B, F = x.shape
    assert F == 10, "CustomNet expects 10 input features"
    if act_dtype is None:
        act_dtype = _default_act_dtype()

    x = x.astype(jnp.float32)          # no-op for f32 inputs; never a bf16 repack pass
    tb = min(tile_b, B)
    grid = (pl.cdiv(B, tb),)           # partial edge block handled by Pallas masking

    # torch convention: weight (out, in); biases kept as columns so they broadcast
    # along the lane (batch) axis in-kernel.  Casting these tiny arrays is negligible.
    w1 = params["w1"].astype(jnp.float32)   # (64, 10)  layer-1 operands stay f32
    b1 = params["b1"].astype(act_dtype)     # (64, 1)
    w2 = params["w2"].astype(act_dtype)     # (32, 64)
    b2 = params["b2"].astype(act_dtype)     # (32, 1)
    w3 = params["w3"].astype(act_dtype)     # (1, 32)
    b3 = params["b3"].astype(jnp.float32)   # (1, 1)   final accumulation stays f32

    def kernel(x_ref, w1_ref, b1_ref, w2_ref, b2_ref, w3_ref, b3_ref, o_ref):
        xt = x_ref[...]                                            # (tb, 10) batch-major
        # Layer 1 on the MXU: NT contraction over the 10-wide feature axis -> result is
        # feature-major (64, tb); the batch lands on the 128-lane axis.
        h = lax.dot_general(w1_ref[...], xt, _NT,
                            preferred_element_type=jnp.float32)    # (64, tb) f32
        # bias + ReLU on the VPU (binding slot); dtype cast fused into the chain.
        h = jnp.maximum(h.astype(act_dtype) + b1_ref[...], 0)

        # Layer 2: plain MXU matmul, f32 accumulation.
        h = lax.dot_general(w2_ref[...], h, _NN,
                            preferred_element_type=jnp.float32)    # (32, tb) f32
        h = jnp.maximum(h.astype(act_dtype) + b2_ref[...], 0)

        # Layer 3 (output width 1) also on the MXU (huge slack), producing a
        # lane-dense (1, tb) row instead of a masked-store (tb, 1) column.
        out = lax.dot_general(w3_ref[...], h, _NN,
                              preferred_element_type=jnp.float32)  # (1, tb) f32
        o_ref[...] = (out + b3_ref[...]).astype(o_ref.dtype)

    const = lambda shape: pl.BlockSpec(shape, lambda i: (0, 0))    # VMEM-resident

    out_row = pl.pallas_call(
        kernel,
        out_shape=jax.ShapeDtypeStruct((1, B), jnp.float32),
        grid=grid,
        in_specs=[
            pl.BlockSpec((tb, 10), lambda i: (i, 0)),   # x tile, pipelined over batch
            const((64, 10)), const((64, 1)),
            const((32, 64)), const((32, 1)),
            const((1, 32)), const((1, 1)),
        ],
        out_specs=pl.BlockSpec((1, tb), lambda i: (0, i)),          # lane-dense output
        compiler_params=pltpu.CompilerParams(
            dimension_semantics=("parallel",),          # megacore sharding on v7x
            # tb=16384 needs ~28 MiB (2x lane-padded x buffers + activations); 48 MiB
            # raises v5e's 16 MiB default while keeping headroom on v7x's 64 MiB VMEM.
            vmem_limit_bytes=48 * 1024 * 1024,
        ),
    )(x, w1, b1, w2, b2, w3, b3)

    # (1, B) -> (B, 1): row-major-identical reshape.  Callers that want to avoid even
    # this layout change at very large B can consume out_row[0] directly.
    return out_row.reshape(B, 1)


def reference_forward(x, params):
    """Pure-JAX reference with torch-convention params."""
    h1 = jnp.maximum(x @ params["w1"].T + params["b1"].T, 0.0)
    h2 = jnp.maximum(h1 @ params["w2"].T + params["b2"].T, 0.0)
    return h2 @ params["w3"].T + params["b3"].T


def init_params(key):
    """torch.nn.Linear-style init: U(-1/sqrt(fan_in), 1/sqrt(fan_in)), weight (out, in)."""
    dims = [(10, 64), (64, 32), (32, 1)]
    params = {}
    keys = jax.random.split(key, 2 * len(dims))
    for i, (fan_in, fan_out) in enumerate(dims):
        bound = 1.0 / math.sqrt(fan_in)
        params[f"w{i + 1}"] = jax.random.uniform(
            keys[2 * i], (fan_out, fan_in), jnp.float32, minval=-bound, maxval=bound)
        params[f"b{i + 1}"] = jax.random.uniform(
            keys[2 * i + 1], (fan_out, 1), jnp.float32, minval=-bound, maxval=bound)
    return params


if __name__ == "__main__":
    key = jax.random.PRNGKey(0)
    k_params, k_x = jax.random.split(key)
    params = init_params(k_params)

    # Small batch that is NOT a tile multiple: exercises the tiled grid and the masked
    # partial edge block (200 = 128 + 72), with f32 activations.
    x = jax.random.normal(k_x, (200, 10), dtype=jnp.float32)
    ref = reference_forward(x, params)

    out_f32 = custom_net_forward(x, params, tile_b=128, act_dtype=jnp.float32)
    jax.block_until_ready(out_f32)
    assert out_f32.shape == (200, 1)
    assert jnp.allclose(out_f32, ref, atol=1e-4, rtol=1e-4), "f32 mismatch"

    # Single-block path (B <= tile_b) with the auto-selected activation dtype.
    out_auto = custom_net_forward(x[:32], params)
    jax.block_until_ready(out_auto)
    assert out_auto.shape == (32, 1)
    assert jnp.allclose(out_auto, ref[:32], atol=5e-2, rtol=5e-2), "auto-dtype mismatch"

    # Explicit bf16 bias/ReLU + bf16 layer-2/3 MXU operands (v6e/v7x fast path; still
    # numerically valid on v5e, just not faster there).
    out_bf16 = custom_net_forward(x, params, tile_b=128, act_dtype=jnp.bfloat16)
    jax.block_until_ready(out_bf16)
    assert jnp.allclose(out_bf16, ref, atol=5e-2, rtol=5e-2), "bf16 mismatch"

    print("KERNEL_OK")
</pallas_src>

<mosaic_0001>
module attributes {stable_mosaic.version = 11 : i64} {
  func.func @kernel(%arg0: i32, %arg1: memref<128x10xf32, #tpu.memory_space<vmem>>, %arg2: memref<64x10xf32, #tpu.memory_space<vmem>>, %arg3: memref<64x1xf32, #tpu.memory_space<vmem>>, %arg4: memref<32x64xf32, #tpu.memory_space<vmem>>, %arg5: memref<32x1xf32, #tpu.memory_space<vmem>>, %arg6: memref<1x32xf32, #tpu.memory_space<vmem>>, %arg7: memref<1x1xf32, #tpu.memory_space<vmem>>, %arg8: memref<1x128xf32, #tpu.memory_space<vmem>>) attributes {dimension_semantics = [#tpu.dimension_semantics<parallel>], iteration_bounds = array<i64: 2>, scalar_prefetch = 0 : i64, scratch_operands = 0 : i64, tpu.core_type = #tpu.core_type<tc>, window_params = [{transform_indices = @transform_0, window_bounds = array<i64: 128, 10>}, {pipeline_mode = #tpu.pipeline_mode<synchronous>, transform_indices = @transform_1, window_bounds = array<i64: 64, 10>}, {pipeline_mode = #tpu.pipeline_mode<synchronous>, transform_indices = @transform_2, window_bounds = array<i64: 64, 1>}, {pipeline_mode = #tpu.pipeline_mode<synchronous>, transform_indices = @transform_3, window_bounds = array<i64: 32, 64>}, {pipeline_mode = #tpu.pipeline_mode<synchronous>, transform_indices = @transform_4, window_bounds = array<i64: 32, 1>}, {pipeline_mode = #tpu.pipeline_mode<synchronous>, transform_indices = @transform_5, window_bounds = array<i64: 1, 32>}, {pipeline_mode = #tpu.pipeline_mode<synchronous>, transform_indices = @transform_6, window_bounds = array<i64: 1, 1>}, {transform_indices = @transform_7, window_bounds = array<i64: 1, 128>}]} {
    %c0 = arith.constant 0 : index
    %c0_0 = arith.constant 0 : index
    %0 = vector.load %arg1[%c0, %c0_0] : memref<128x10xf32, #tpu.memory_space<vmem>>, vector<128x10xf32>
    %c0_1 = arith.constant 0 : index
    %c0_2 = arith.constant 0 : index
    %1 = vector.load %arg2[%c0_1, %c0_2] : memref<64x10xf32, #tpu.memory_space<vmem>>, vector<64x10xf32>
    %cst = arith.constant dense<0.000000e+00> : vector<64x128xf32>
    %2 = tpu.matmul %1, %0, %cst {dimension_numbers = #tpu.dot_dimension_numbers<[1], [1], [0], [0], [0, 0, 1, 0], [], []>} : vector<64x10xf32>, vector<128x10xf32>, vector<64x128xf32> -> vector<64x128xf32>
    %c0_3 = arith.constant 0 : index
    %c0_4 = arith.constant 0 : index
    %3 = vector.load %arg3[%c0_3, %c0_4] : memref<64x1xf32, #tpu.memory_space<vmem>>, vector<64x1xf32>
    %4 = vector.broadcast %3 : vector<64x1xf32> to vector<64x128xf32>
    %5 = arith.addf %2, %4 : vector<64x128xf32>
    %cst_5 = arith.constant 0.000000e+00 : f32
    %6 = vector.broadcast %cst_5 : f32 to vector<64x128xf32>
    %7 = arith.maximumf %5, %6 : vector<64x128xf32>
    %c0_6 = arith.constant 0 : index
    %c0_7 = arith.constant 0 : index
    %8 = vector.load %arg4[%c0_6, %c0_7] : memref<32x64xf32, #tpu.memory_space<vmem>>, vector<32x64xf32>
    %cst_8 = arith.constant dense<0.000000e+00> : vector<32x128xf32>
    %9 = tpu.matmul %8, %7, %cst_8 {dimension_numbers = #tpu.dot_dimension_numbers<[1], [0], [0], [1], [0, 0, 1, 1], [], []>} : vector<32x64xf32>, vector<64x128xf32>, vector<32x128xf32> -> vector<32x128xf32>
    %c0_9 = arith.constant 0 : index
    %c0_10 = arith.constant 0 : index
    %10 = vector.load %arg5[%c0_9, %c0_10] : memref<32x1xf32, #tpu.memory_space<vmem>>, vector<32x1xf32>
    %11 = vector.broadcast %10 : vector<32x1xf32> to vector<32x128xf32>
    %12 = arith.addf %9, %11 : vector<32x128xf32>
    %cst_11 = arith.constant 0.000000e+00 : f32
    %13 = vector.broadcast %cst_11 : f32 to vector<32x128xf32>
    %14 = arith.maximumf %12, %13 : vector<32x128xf32>
    %c0_12 = arith.constant 0 : index
    %c0_13 = arith.constant 0 : index
    %15 = vector.load %arg6[%c0_12, %c0_13] : memref<1x32xf32, #tpu.memory_space<vmem>>, vector<1x32xf32>
    %cst_14 = arith.constant dense<0.000000e+00> : vector<1x128xf32>
    %16 = tpu.matmul %15, %14, %cst_14 {dimension_numbers = #tpu.dot_dimension_numbers<[1], [0], [0], [1], [0, 0, 1, 1], [], []>} : vector<1x32xf32>, vector<32x128xf32>, vector<1x128xf32> -> vector<1x128xf32>
    %c0_15 = arith.constant 0 : index
    %c0_16 = arith.constant 0 : index
    %17 = vector.load %arg7[%c0_15, %c0_16] : memref<1x1xf32, #tpu.memory_space<vmem>>, vector<1x1xf32>
    %18 = vector.broadcast %17 : vector<1x1xf32> to vector<1x128xf32>
    %19 = arith.addf %16, %18 : vector<1x128xf32>
    %c0_17 = arith.constant 0 : index
    %c0_18 = arith.constant 0 : index
    %20 = vector.load %arg8[%c0_17, %c0_18] : memref<1x128xf32, #tpu.memory_space<vmem>>, vector<1x128xf32>
    tpu.vector_store %arg8[%c0_17, %c0_18], %19 {strides = array<i32>} : memref<1x128xf32, #tpu.memory_space<vmem>>, vector<1x128xf32>,
    return
  }
  func.func @transform_0(%arg0: i32) -> (i32, i32) {
    %c0_i32 = arith.constant 0 : i32
    %c0_i32_0 = arith.constant 0 : i32
    return %arg0, %c0_i32 : i32, i32
  }
  func.func @transform_1(%arg0: i32) -> (i32, i32) {
    %c0_i32 = arith.constant 0 : i32
    %c0_i32_0 = arith.constant 0 : i32
    %c0_i32_1 = arith.constant 0 : i32
    return %c0_i32, %c0_i32_0 : i32, i32
  }
  func.func @transform_2(%arg0: i32) -> (i32, i32) {
    %c0_i32 = arith.constant 0 : i32
    %c0_i32_0 = arith.constant 0 : i32
    %c0_i32_1 = arith.constant 0 : i32
    return %c0_i32, %c0_i32_0 : i32, i32
  }
  func.func @transform_3(%arg0: i32) -> (i32, i32) {
    %c0_i32 = arith.constant 0 : i32
    %c0_i32_0 = arith.constant 0 : i32
    %c0_i32_1 = arith.constant 0 : i32
    return %c0_i32, %c0_i32_0 : i32, i32
  }
  func.func @transform_4(%arg0: i32) -> (i32, i32) {
    %c0_i32 = arith.constant 0 : i32
    %c0_i32_0 = arith.constant 0 : i32
    %c0_i32_1 = arith.constant 0 : i32
    return %c0_i32, %c0_i32_0 : i32, i32
  }
  func.func @transform_5(%arg0: i32) -> (i32, i32) {
    %c0_i32 = arith.constant 0 : i32
    %c0_i32_0 = arith.constant 0 : i32
    %c0_i32_1 = arith.constant 0 : i32
    return %c0_i32, %c0_i32_0 : i32, i32
  }
  func.func @transform_6(%arg0: i32) -> (i32, i32) {
    %c0_i32 = arith.constant 0 : i32
    %c0_i32_0 = arith.constant 0 : i32
    %c0_i32_1 = arith.constant 0 : i32
    return %c0_i32, %c0_i32_0 : i32, i32
  }
  func.func @transform_7(%arg0: i32) -> (i32, i32) {
    %c0_i32 = arith.constant 0 : i32
    %c0_i32_0 = arith.constant 0 : i32
    return %c0_i32, %arg0 : i32, i32
  }
}

</mosaic_0001>

<bundles_post_ra>
// kernel: custom_net_forward.1
= control target key start
LH: loop header
LB: loop body
LE: loop exit
PB: predicated region body
PF: predicated region fallthrough
CT: control target
= control target key end

     0   :  { %s1467_s0 = inlined_call_operand.vmem [shape: f32[200,10], index: 0, kind: input, shape index: {}]   ;;  %s1468_s1 = inlined_call_operand.vmem [shape: f32[64,10], index: 1, kind: input, shape index: {}]   ;;  %s1469_s2 = inlined_call_operand.vmem [shape: f32[64,1], index: 2, kind: input, shape index: {}]   ;;  %s1470_s3 = inlined_call_operand.vmem [shape: f32[32,64], index: 3, kind: input, shape index: {}]   ;;  %s1471_s4 = inlined_call_operand.vmem [shape: f32[32,1], index: 4, kind: input, shape index: {}]   ;;  %s1472_s5 = inlined_call_operand.vmem [shape: f32[1,32], index: 5, kind: input, shape index: {}]   ;;  %s1473_s6 = inlined_call_operand.<no memory space> [shape: f32[1,1], index: 6, kind: input, shape index: {}]   ;;  %s1474_s7 = inlined_call_operand.hbm [shape: f32[1,200], index: 7, kind: output, shape index: {}]  }
   0x1   :  { %v12_v0 = vstv %s1473_s6 }
   0x2   :  { %13 = vst [vmem:[#allocation2] sm:$0x1] %v12_v0 }
   0x3   :  { %14 = vsyncpa [#allocation4], 0 }
   0x4   :  { %16 = vsyncpa [#allocation4 + $0x1], 0  ;;  %s1225_s26 = smov 0   ;;  %s1227_s27 = smov 0  }
   0x5   :  { %s1229_s28 = smov 0   ;;  %s1231_s29 = smov 0  }
   0x6 LB: > { %s841_s6 = sadd.s32 4294967295, %s1175_s29   ;;  %s842_s30 = sadd.s32 4294967294, %s1175_s29   ;;  %s1175_s29 = sphi %s1231_s29, %s1482_s29   ;;  %s1171_s28 = sphi %s1229_s28, %s1481_s28   ;;  %s1167_s27 = sphi %s1227_s27, %s1480_s27   ;;  %s1163_s26 = sphi %s1225_s26, %s1479_s26  }
   0x7   : > { %s1248_s8 = sadd.s32 1, %s1175_s29   ;;  %s181_s9 = sadd.s32 1, %s1171_s28 }
   0x8   : > { %s178_s10 = ssub.s32 %s1175_s29, %s1248_s8  ;;  %p191_p0 = scmp.ne.s32.totalorder %s1171_s28, %s1167_s27 }
   0x9   : > { %p179_p1 = scmp.eq.s32.totalorder %s178_s10, 0  ;;  %p192_p2 = scmp.eq.s32.totalorder %s841_s6, 1 }
   0xa   : > { %p197_p3 = scmp.ne.s32.totalorder %s1167_s27, %s1163_s26  ;;  %p198_p4 = scmp.eq.s32.totalorder %s842_s30, 1 }
   0xb   : > { %s1258_s11 = scalar_select %p179_p1, %s1171_s28, %s181_s9  }
   0xc   : > { %p1260_p5 = por %p192_p2, %p191_p0  ;;  %p1264_p6 = por %p198_p4, %p197_p3 }
   0xd   : > { %p845_p7 = scmp.ge.s32.totalorder %s1175_s29, 1  ;;  %p251_p8 = scmp.lt.s32.totalorder %s1175_s29, 3 }
   0xf   : > { %p252_p9 = pnand %p845_p7, %p251_p8 }
  0x10   : > { %s1270_s14 = sshll.u32 (!%p252_p9), %s841_s6, 4  ;;  %vm372_vm0 = vcmask (!%p252_p9), 80896   ;;  %v316_v1 = vld [vmem:[%s1468_s1] sm:$0xff] (!%p252_p9)  ;;  %v1177_v2 = vmov (!%p252_p9), 0   ;;  %v326_v4 = vld [vmem:[%s1469_s2 + $0x10] sm:$0xff] (!%p252_p9)  ;;  %v325_v5 = vld [vmem:[%s1469_s2 + $0x8] sm:$0xff] (!%p252_p9) }
  0x11   : > { %255 = sbr.rel (%p252_p9) target bundleno = 784 (0x310), region = 48  ;;  %p291_p10 = scmp.lt.s32.totalorder (!%p252_p9), %s1270_s14, 24  ;;  %953 = vmatprep.mubr.msk.f32.mxu0 (!%p252_p9), %vm372_vm0, %v316_v1  ;;  %1111 = vset.pattern.permute.xlu0 (!%p252_p9), %v1177_v2  ;;  %v324_v3 = vld [vmem:[%s1469_s2] sm:$0xff] (!%p252_p9)  ;;  %v327_v6 = vld [vmem:[%s1469_s2 + $0x18] sm:$0xff] (!%p252_p9)  ;;  %vm1297_vm1 = vmpackc.low (!%p252_p9), %vm372_vm0, %vm372_vm0  ;;  %vm586_vm2 = vcmask (!%p252_p9), 523264   ;;  %vm1179_vm3 = vmmov (!%p252_p9), 0  }
  0x12   : > { %1112 = vset.pattern.permute.xlu1 (!%p252_p9), %v1177_v2  ;;  %334 = vperm.xlu0 (!%p252_p9), %1111, %v324_v3   ;;  %v328_v14 = vld [vmem:[%s1469_s2 + $0x20] sm:$0xff] (!%p252_p9)  ;;  %v329_v15 = vld [vmem:[%s1469_s2 + $0x28] sm:$0xff] (!%p252_p9)  ;;  %v330_v18 = vld [vmem:[%s1469_s2 + $0x30] sm:$0xff] (!%p252_p9)  ;;  %vm699_vm4 = vcmask (!%p252_p9), 261120   ;;  %s284_s25 = sand.u32 (!%p252_p9), 1, %s1167_s27   ;;  %s1425_s16 = scalar_lea.hbm (!%p252_p9), %s1474_s7, %s1270_s14 }
  0x13   : > { %344 = vperm.xlu1 (!%p252_p9), %1112, %v326_v4   ;;  %v331_v19 = vld [vmem:[%s1469_s2 + $0x38] sm:$0xff] (!%p252_p9)  ;;  %v562_v21 = vld [vmem:[%s1471_s4] sm:$0xff] (!%p252_p9)  ;;  %v563_v22 = vld [vmem:[%s1471_s4 + $0x8] sm:$0xff] (!%p252_p9)  ;;  %s285_s6 = scalar_lea.vmem (!%p252_p9), [#allocation3], %s284_s25  ;;  %s1181_s19 = smov (!%p252_p9), [#allocation3]  }
  0x14   : > { %v564_v25 = vld [vmem:[%s1471_s4 + $0x10] sm:$0xff] (!%p252_p9)  ;;  %v565_v26 = vld [vmem:[%s1471_s4 + $0x18] sm:$0xff] (!%p252_p9)  ;;  %v689_v28 = vld [vmem:[#allocation2] sm:$0x1] (!%p252_p9)  ;;  %s787_s30 = sshll.u32 (!%p252_p9), %s285_s6, 4  ;;  %s1117_s20 = sshll.u32 (!%p252_p9), %s1181_s19, 4  ;;  %s1427_s30 = int_to_ptr.vmem [resolvable:$true] %s787_s30  ;;  %s1118_s20 = int_to_ptr.vmem [resolvable:$false] %s1117_s20 }
  0x15   : > { %v317_v41 = vld [vmem:[%s1468_s1 + $0x8] sm:$0xff] (!%p252_p9)  ;;  %v318_v42 = vld [vmem:[%s1468_s1 + $0x10] sm:$0xff] (!%p252_p9)  ;;  %v319_v43 = vld [vmem:[%s1468_s1 + $0x18] sm:$0xff] (!%p252_p9)  ;;  %s1113_s18 = scalar_lea.vmem (!%p252_p9), %s1427_s30, 16  ;;  %p1120_p0 = scmp.lt.s32.totalorder (!%p252_p9), %s1427_s30, %s1118_s20 }
  0x16   : > { %339 = vperm.xlu0 (!%p252_p9), %1111, %v325_v5   ;;  %v320_v44 = vld [vmem:[%s1468_s1 + $0x20] sm:$0xff] (!%p252_p9)  ;;  %v321_v45 = vld [vmem:[%s1468_s1 + $0x28] sm:$0xff] (!%p252_p9)  ;;  %v322_v46 = vld [vmem:[%s1468_s1 + $0x30] sm:$0xff] (!%p252_p9)  ;;  %p1114_p11 = scmp.ne.s32.totalorder (!%p252_p9), %s1427_s30, %s1113_s18 }
  0x17   : > { %349 = vperm.xlu1 (!%p252_p9), %1112, %v327_v6   ;;  %v323_v47 = vld [vmem:[%s1468_s1 + $0x38] sm:$0xff] (!%p252_p9)  ;;  %v558_v48 = vld [vmem:[%s1470_s3] sm:$0xff] (!%p252_p9) }
  0x18   : > { %s292_s17 = scalar_select %p291_p10, %s1270_s14, 24  ;;  %981 = vmatprep.mubr.msk.f32.mxu1 %vm586_vm2, %v558_v48 }
  0x19   : > { %p1115_p12 = pnand %p1114_p11, %p1260_p5 }
  0x1a   : > { %s847_s22 = sshll.u32 %s292_s17, 3  ;;  %354 = vperm.xlu0 %1111, %v328_v14   ;;  %s775_s17 = scalar_lea.sflag [#allocation4], %s284_s25 }
  0x1b   : > { %s1293_s10 = scalar_lea.vmem %s1467_s0, %s847_s22  ;;  %359 = vperm.xlu1 %1112, %v329_v15   ;;  %p1116_p13 = pneg %p1115_p12 }
  0x1c   : > { %v300_v8 = vld [vmem:[%s1293_s10] sm:$0xff]  ;;  %v301_v9 = vld [vmem:[%s1293_s10 + $0x8] sm:$0xff]  ;;  %v302_v10 = vld [vmem:[%s1293_s10 + $0x10] sm:$0xff] }
  0x1d   : > { %v998_v11 = vpack.c.bf16 %v301_v9, %v300_v8  ;;  %v303_v12 = vld [vmem:[%s1293_s10 + $0x18] sm:$0xff]  ;;  %v304_v16 = vld [vmem:[%s1293_s10 + $0x20] sm:$0xff]  ;;  %v305_v17 = vld [vmem:[%s1293_s10 + $0x28] sm:$0xff] }
  0x1e   : > { %v1004_v13 = vpack.c.bf16 %v303_v12, %v302_v10  ;;  %v1010_v20 = vpack.c.bf16 %v305_v17, %v304_v16  ;;  %364 = vperm.xlu0 %1111, %v330_v18   ;;  %v306_v23 = vld [vmem:[%s1293_s10 + $0x30] sm:$0xff]  ;;  %v307_v24 = vld [vmem:[%s1293_s10 + $0x38] sm:$0xff]  ;;  %v308_v29 = vld [vmem:[%s1293_s10 + $0x40] sm:$0xff] }
  0x1f   : > { %1000 = vmatprep.subr.msk.bf16.mxu0 %vm1297_vm1, %v998_v11  ;;  %369 = vperm.xlu1 %1112, %v331_v19   ;;  %v1016_v27 = vpack.c.bf16 %v307_v24, %v306_v23  ;;  %v309_v30 = vld [vmem:[%s1293_s10 + $0x48] sm:$0xff]  ;;  %v310_v32 = vld [vmem:[%s1293_s10 + $0x50] sm:$0xff]  ;;  %v311_v33 = vld [vmem:[%s1293_s10 + $0x58] sm:$0xff]  ;;  %v1178_v24 = vmov 0.0|0.0  }
  0x20   : > { %1003 = vmatpush3.bf16.xpose.msk.msra.mxu0 %vm1297_vm1, %v998_v11  ;;  %v1022_v31 = vpack.c.bf16 %v309_v30, %v308_v29  ;;  %v1028_v34 = vpack.c.bf16 %v311_v33, %v310_v32  ;;  %v312_v35 = vld [vmem:[%s1293_s10 + $0x60] sm:$0xff]  ;;  %v313_v36 = vld [vmem:[%s1293_s10 + $0x68] sm:$0xff]  ;;  %v314_v38 = vld [vmem:[%s1293_s10 + $0x70] sm:$0xff] }
  0x21   : > { %1006 = vmatprep.subr.msk.bf16.mxu0 %vm1297_vm1, %v1004_v13  ;;  %v1034_v37 = vpack.c.bf16 %v313_v36, %v312_v35  ;;  %v315_v39 = vld [vmem:[%s1293_s10 + $0x78] sm:$0xff]  ;;  %s1119_s10 = scalar_lea.vmem %s1118_s20, 32 }
  0x22   : > { %568 = vperm.xlu0 %1111, %v562_v21   ;;  %v1040_v40 = vpack.c.bf16 %v315_v39, %v314_v38  ;;  %v559_v21 = vld [vmem:[%s1470_s3 + $0x8] sm:$0xff]  ;;  %v561_v23 = vld [vmem:[%s1470_s3 + $0x18] sm:$0xff]  ;;  %p1121_p1 = scmp.lt.s32.totalorder %s1119_s10, %s1113_s18 }
  0x23   : > { %573 = vperm.xlu1 %1112, %v563_v22   ;;  %v560_v22 = vld [vmem:[%s1470_s3 + $0x10] sm:$0xff] }
  0x24   : > { %p1122_p2 = por %p1121_p1, %p1120_p0 }
  0x26   : > { %578 = vperm.xlu0 %1111, %v564_v25   ;;  %v1180_v25 = vmov 0.0   ;;  %p1123_p3 = pnand %p1122_p2, %p1116_p13 }
  0x27   : > { %583 = vperm.xlu1 %1112, %v565_v26  }
  0x28   : > { %1009 = vmatpush3.bf16.xpose.msk.msra.mxu0 %vm1297_vm1, %v1004_v13 }
  0x29   : > { %1012 = vmatprep.subr.msk.bf16.mxu0 %vm1297_vm1, %v1010_v20 }
  0x2a   : > { %692 = vperm.xlu0 %1111, %v689_v28  }
  0x30   : > { %1015 = vmatpush3.bf16.xpose.msk.msra.mxu0 %vm1297_vm1, %v1010_v20 }
  0x31   : > { %1018 = vmatprep.subr.msk.bf16.mxu0 %vm1297_vm1, %v1016_v27 }
  0x38   : > { %1021 = vmatpush3.bf16.xpose.msk.msra.mxu0 %vm1297_vm1, %v1016_v27 }
  0x39   : > { %1024 = vmatprep.subr.msk.bf16.mxu0 %vm1297_vm1, %v1022_v31 }
  0x40   : > { %1027 = vmatpush3.bf16.xpose.msk.msra.mxu0 %vm1297_vm1, %v1022_v31 }
  0x41   : > { %1030 = vmatprep.subr.msk.bf16.mxu0 %vm1297_vm1, %v1028_v34 }
  0x48   : > { %1033 = vmatpush3.bf16.xpose.msk.msra.mxu0 %vm1297_vm1, %v1028_v34 }
  0x49   : > { %1036 = vmatprep.subr.msk.bf16.mxu0 %vm1297_vm1, %v1034_v37 }
  0x50   : > { %1039 = vmatpush3.bf16.xpose.msk.msra.mxu0 %vm1297_vm1, %v1034_v37 }
  0x51   : > { %1042 = vmatprep.subr.msk.bf16.mxu0 %vm1297_vm1, %v1040_v40 }
  0x58   : > { %1045 = vmatpush3.bf16.xpose.msk.msra.mxu0 %vm1297_vm1, %v1040_v40 }
  0x5f   : > { %954 = vmatmul.mubr.msk.f32.vlgmr.msra.gmra.mrb[0].mxu0 %vm372_vm0, %v317_v41 }
  0x60   : > { %956 = vmatprep.mubr.msk.f32.mxu0 %vm372_vm0, %v318_v42 }
  0x63   : > { %957 = vmatmul.mubr.msk.f32.gmra.mrb[2].mxu0 %vm372_vm0, %v319_v43 }
  0x64   : > { %959 = vmatprep.mubr.msk.f32.mxu0 %vm372_vm0, %v320_v44  ;;  %v688_v44 = vld [vmem:[%s1472_s5] sm:$0x1] }
  0x67   : > { %960 = vmatmul.mubr.msk.f32.gmra.mrb[4].mxu0 %vm372_vm0, %v321_v45  ;;  %v695_v45 = vlaneseq }
  0x68   : > { %962 = vmatprep.mubr.msk.f32.mxu0 %vm372_vm0, %v322_v46 }
  0x69   : > { %v696_v46 = vshrl.u32 %v695_v45, 7 }
  0x6b   : > { %963 = vmatmul.mubr.msk.f32.gmra.mrb[6].mxu0 %vm372_vm0, %v323_v47  ;;  %v697_v47 = vsub.s32 0, %v696_v46 }
  0x91   : > { %v335_v49 = vpop.permute.xlu0 %334 }
  0x92   : > { %v345_v50 = vpop.permute.xlu1 %344 }
  0x95   : > { %v340_v51 = vpop.permute.xlu0 %339 }
  0x96   : > { %v350_v52 = vpop.permute.xlu1 %349 }
  0x99   : > { %v355_v1 = vpop.permute.xlu0 %354 }
  0x9a   : > { %v360_v62 = vpop.permute.xlu1 %359 }
  0x9d   : > { %v365_v13 = vpop.permute.xlu0 %364 }
  0x9e   : > { %v370_v10 = vpop.permute.xlu1 %369 }
  0xa1   : > { %v569_v27 = vpop.permute.xlu0 %568 }
  0xa2   : > { %v574_v26 = vpop.permute.xlu1 %573 }
  0xa5   : > { %v579_v36 = vpop.permute.xlu0 %578 }
  0xa6   : > { %v584_v33 = vpop.permute.xlu1 %583 }
  0xa9   : > { %v693_v48 = vpop.permute.xlu0 %692 }
 0x132   : > { %v955_v53 = vpop.f32.mrb[0].mxu0 }
 0x133   : > { %v517_v54 = vadd.f32 %v955_v53, %v340_v51  ;;  %v511_v55 = vpop.f32.mrb[1].mxu0 }
 0x134   : > { %v512_v56 = vadd.f32 %v511_v55, %v335_v49  ;;  %v698_v49 = vrot.slane %v693_v48, %v697_v47 }
 0x135   : > { %v551_v57 = vmax.f32 %v517_v54, 0.0 }
 0x136   : > { %v550_v58 = vmax.f32 %v512_v56, 0.0  ;;  %v958_v59 = vpop.f32.mrb[2].mxu0 }
 0x137   : > { %v527_v60 = vadd.f32 %v958_v59, %v350_v52  ;;  %v521_v61 = vpop.f32.mrb[3].mxu0 }
 0x138   : > { %v522_v63 = vadd.f32 %v521_v61, %v345_v50  ;;  %v1046_v0 = vpack.c.bf16 %v551_v57, %v550_v58 }
 0x139   : > { %v553_v2 = vmax.f32 %v527_v60, 0.0 }
 0x13a   : > { %v552_v3 = vmax.f32 %v522_v63, 0.0  ;;  %v961_v4 = vpop.f32.mrb[4].mxu0  ;;  %1047 = vmatprep.subr.bf16.mxu1 %v1046_v0 }
 0x13b   : > { %v537_v5 = vadd.f32 %v961_v4, %v360_v62  ;;  %v531_v6 = vpop.f32.mrb[5].mxu0  ;;  %1049 = vmatpush3.bf16.msra.mxu1 %v1046_v0 }
 0x13c   : > { %v1050_v7 = vpack.c.bf16 %v553_v2, %v552_v3  ;;  %v532_v8 = vadd.f32 %v531_v6, %v355_v1 }
 0x13d   : > { %v555_v9 = vmax.f32 %v537_v5, 0.0 }
 0x13e   : > { %v554_v11 = vmax.f32 %v532_v8, 0.0  ;;  %v964_v12 = vpop.f32.mrb[6].mxu0  ;;  %1051 = vmatprep.subr.bf16.mxu1 %v1050_v7 }
 0x13f   : > { %v547_v14 = vadd.f32 %v964_v12, %v370_v10  ;;  %v541_v15 = vpop.f32.mrb[7].mxu0  ;;  %1053 = vmatpush3.bf16.msra.mxu1 %v1050_v7 }
 0x140   : > { %v1054_v16 = vpack.c.bf16 %v555_v9, %v554_v11  ;;  %v542_v17 = vadd.f32 %v541_v15, %v365_v13 }
 0x141   : > { %v557_v18 = vmax.f32 %v547_v14, 0.0 }
 0x142   : > { %v556_v19 = vmax.f32 %v542_v17, 0.0  ;;  %1055 = vmatprep.subr.bf16.mxu1 %v1054_v16 }
 0x143   : > { %1057 = vmatpush3.bf16.msra.mxu1 %v1054_v16 }
 0x144   : > { %v1058_v20 = vpack.c.bf16 %v557_v18, %v556_v19 }
 0x146   : > { %1059 = vmatprep.subr.bf16.mxu1 %v1058_v20 }
 0x147   : > { %1061 = vmatpush3.bf16.msra.mxu1 %v1058_v20 }
 0x148   : > { %1062 = vmatprep.subr.bf16.mxu1 %v1178_v24 }
 0x14a   : > { %982 = vmatmul.mubr.msk.f32.vlgmr.msra.gmra.mrb[0].mxu1 %vm586_vm2, %v559_v21 }
 0x14b   : > { %984 = vmatprep.mubr.msk.f32.mxu1 %vm586_vm2, %v560_v22 }
 0x14e   : > { %985 = vmatmul.mubr.msk.f32.gmra.mrb[2].mxu1 %vm586_vm2, %v561_v23 }
 0x14f   : > { %995 = vmatprep.mubr.msk.f32.mxu1 %vm1179_vm3, %v1180_v25 }
 0x21d   : > { %v983_v28 = vpop.f32.mrb[0].mxu1 }
 0x21e   : > { %v671_v29 = vadd.f32 %v983_v28, %v574_v26  ;;  %v665_v30 = vpop.f32.mrb[1].mxu1 }
 0x21f   : > { %v666_v31 = vadd.f32 %v665_v30, %v569_v27 }
 0x220   : > { %v685_v32 = vmax.f32 %v671_v29, 0.0 }
 0x221   : > { %v684_v34 = vmax.f32 %v666_v31, 0.0  ;;  %v986_v35 = vpop.f32.mrb[2].mxu1 }
 0x222   : > { %v681_v37 = vadd.f32 %v986_v35, %v584_v33  ;;  %v675_v38 = vpop.f32.mrb[3].mxu1 }
 0x223   : > { %v1063_v39 = vpack.c.bf16 %v685_v32, %v684_v34  ;;  %v676_v40 = vadd.f32 %v675_v38, %v579_v36 }
 0x224   : > { %v687_v41 = vmax.f32 %v681_v37, 0.0 }
 0x225   : > { %v686_v42 = vmax.f32 %v676_v40, 0.0  ;;  %1064 = vmatpush3.bf16.msra.mxu1 %v1063_v39 }
 0x226   : > { %1065 = vmatprep.subr.bf16.mxu1 %v1178_v24 }
 0x227   : > { %v1066_v43 = vpack.c.bf16 %v687_v41, %v686_v42 }
 0x229   : > { %1067 = vmatpush3.bf16.msra.mxu1 %v1066_v43 }
 0x22c   : > { %996 = vmatmul.mubr.msk.f32.vlgmr.msra.gmra.mrb[4].mxu1 %vm699_vm4, %v688_v44 }
 0x2ff   : > { %v769_v50 = vpop.f32.mrb[4].mxu1 }
 0x300   : > { %v770_v51 = vadd.f32 %v769_v50, %v698_v49  ;;  %v997_v52 = vpop.f32.mrb[5].mxu1 }
 0x302   : > { %773 = vst [vmem:[%s285_s6] sm:$0x1] %v770_v51 }
 0x303   : > { %1126 = shalt.err (!%p1123_p3)
}
 0x304   : > { %s1127_s14 = scalar_lea.hbm %s1425_s16, 16  ;;  %s1131_s23 = scalar_lea.hbm %s1474_s7, 32 }
 0x305   : > { %p1128_p4 = scmp.ne.s32.totalorder %s1425_s16, %s1127_s14  ;;  %p1132_p9 = scmp.lt.u32.totalorder %s1425_s16, %s1474_s7 }
 0x306   : > { %p1133_p10 = scmp.lt.u32.totalorder %s1131_s23, %s1127_s14  ;;  %p1135_p12 = scmp.lt.u32.totalorder %s1127_s14, %s1425_s16 }
 0x307   : > { %p1129_p7 = pnand %p1128_p4, %p1260_p5 }
 0x308   : > { %p1134_p11 = por %p1133_p10, %p1132_p9 }
 0x309   : > { %p1130_p8 = pneg %p1129_p7 }
 0x30a   : > { %p1136_p13 = por %p1135_p12, %p1134_p11 }
 0x30c   : > { %p1137_p0 = pnand %p1136_p13, %p1130_p8 }
 0x30e   : > { %1140 = shalt.err (!%p1137_p0)
}
 0x30f   : > { %1068 = dma.vmem_to_hbm [thread:$0]  (%p1260_p5), %s1427_s30, 16, %s1425_s16, %s775_s17  }
 0x310 PF: > { %p1074_p1 = scmp.ge.s32.totalorder %s1175_s29, 2  ;;  %s799_s6 = sand.u32 1, %s1163_s26  }
 0x311   : > { %s800_s9 = scalar_lea.sflag [#allocation4], %s799_s6 }
 0x312   : > { %p1071_p2 = pnand %p1074_p1, %p1264_p6 }
 0x314   : > { %1158 = dma.done.wait (!%p1071_p2), %s800_s9, 16  }
 0x315   : > { %1160 = vsyncadd (!%p1071_p2), %s800_s9, 4294967280  ;;  %p19_p3 = scmp.ge.s32.totalorder %s1248_s8, 4   ;;  %s1479_s26 = smov %s1167_s27 }
 0x316   : > { %s1480_s27 = smov %s1171_s28  ;;  %s1481_s28 = smov %s1258_s11 }
 0x317   : > { %s1482_s29 = smov %s1248_s8  ;;  %21 = sbr.rel (!%p19_p3) target bundleno = 6 (0x6), region = 83 }
 0x31e   :  { %804 = vsyncpa [#allocation4], 1 }
 0x31f   :  { %806 = vsyncpa [#allocation4 + $0x1], 1 }

</bundles_post_ra>
